<compile_context>
chip_gen: v5e
topology: v5e:2x2
jax: 0.10.0
libtpu: 0.0.40
codegen_flags: <defaults>
</compile_context>

<pallas_src>
import functools
import warnings

import jax
import jax.numpy as jnp
from jax.experimental import pallas as pl
from jax.experimental.pallas import tpu as pltpu


def _freq_mask_kernel(blk_ref, m_ref, x_ref, o_ref):
    """o = where(keep, x, 0) on one (G, F_BLK, T_BLK) tile.

    blk_ref: SMEM scalar-prefetch ref of visited F-block ids (used only by the
             index_maps).
    m_ref:   (1, F_BLK, L) keep multiplier (nonzero = keep), L in {1, T_BLK}.
    x_ref / o_ref: (G, F_BLK, T_BLK) tile; o aliases x in HBM.
    """
    del blk_ref
    x = x_ref[...]
    o_ref[...] = jnp.where(m_ref[...] != 0, x, jnp.zeros_like(x))


def _row_keep_bool(key, num_freqs, freq_mask_param, num_freq_masks):
    """(F,) bool: False on rows inside any mask band.

    torchaudio mask_along_axis semantics: value ~ U[0, P), min ~ U[0, F-value),
    band = [int(min), int(min + value)).  Sequential zero-masking == union.
    """
    # TODO(synk): the degenerate freq_mask_param > F regime (negative start,
    # torch's negative-index slice wrap) is not reproduced.
    f_idx = jnp.arange(num_freqs, dtype=jnp.int32)
    keep = jnp.ones((num_freqs,), dtype=jnp.bool_)
    for _ in range(num_freq_masks):
        key, k_val, k_min = jax.random.split(key, 3)
        value = jax.random.uniform(k_val, ()) * freq_mask_param
        min_value = jax.random.uniform(k_min, ()) * (num_freqs - value)
        start = jnp.floor(min_value).astype(jnp.int32)
        end = jnp.floor(min_value + value).astype(jnp.int32)
        keep = keep & ~((f_idx >= start) & (f_idx < end))
    return keep


def _hit_block_ids(keep_bool, f_blk, maxb):
    """Sorted ids of F-blocks containing any masked row, padded (with the last
    valid id, or 0 if none) to the static length `maxb`."""
    num_freqs = keep_bool.shape[0]
    nblk = num_freqs // f_blk
    hit = jnp.any(~keep_bool.reshape(nblk, f_blk), axis=1)          # (nblk,)
    idx = jnp.arange(nblk, dtype=jnp.int32)
    sort_key = jnp.where(hit, idx, jnp.int32(nblk))                 # miss -> sentinel
    order = jnp.sort(sort_key)                                      # hits first, ascending
    picked = order[:maxb]
    nhit = jnp.sum(hit.astype(jnp.int32))
    last_valid = jnp.where(nhit > 0, order[jnp.maximum(nhit - 1, 0)], jnp.int32(0))
    return jnp.where(picked >= nblk, last_valid, picked).astype(jnp.int32)


def _vmem_capacity_bytes():
    try:
        cap = getattr(pltpu.get_tpu_info(), "vmem_capacity_bytes", None)
        if cap:
            return int(cap)
    except Exception:
        pass
    return 64 << 20  # conservative default (v7x per-TensorCore VMEM)


def _largest_divisor_at_most(n, cap):
    cap = max(1, min(cap, n))
    return max(d for d in range(1, cap + 1) if n % d == 0)


@functools.partial(jax.jit,
                   static_argnames=("freq_mask_param", "num_freq_masks"),
                   donate_argnums=(0,))
def custom_frequency_masking(spec, key, *, freq_mask_param=70, num_freq_masks=1):
    """Pallas implementation of CustomFrequencyMasking.forward.

    spec: (B, C, F, T) float array.  DONATED: masked in place (callers must not
          reuse the argument after the call).
    key:  JAX PRNG key for the mask positions (same mask for every batch /
          channel slice, matching FrequencyMasking(iid_masks=False)).
    """
    B, C, F, T = spec.shape
    BC = B * C
    itemsize = spec.dtype.itemsize
    x = spec.reshape(BC, F, T)  # row-major dim merge: bitcast, alias survives

    # ---- mask draw (tiny, plain JAX) ---------------------------------------
    keep_bool = _row_keep_bool(key, F, freq_mask_param, num_freq_masks)

    # ---- generation-aware sizing -------------------------------------------
    vmem_cap = _vmem_capacity_bytes()
    if vmem_cap >= (96 << 20):          # v5e / v6e: 128 MiB physical VMEM
        target_tile_bytes = 8 << 20
        vmem_ceiling = 96 << 20
    else:                               # v7x: 64 MiB per TensorCore
        target_tile_bytes = 4 << 20
        vmem_ceiling = 56 << 20

    # ---- F blocking (data-dependent band skipping) --------------------------
    f_blk = 8 if (F % 8 == 0 and F > 8) else F
    if f_blk < F:
        # If the bands can cover (almost) all of F anyway, large simple blocks
        # beat many tiny data-dependent ones.
        worst_rows = num_freq_masks * (min(freq_mask_param, F) + 2 * f_blk)
        if worst_rows >= F:
            f_blk = F
    num_f_blocks = F // f_blk

    if f_blk == F:
        maxb = 1
    else:
        blocks_per_band = min(num_f_blocks,
                              (max(freq_mask_param, 1) - 1) // f_blk + 2)
        maxb = max(1, min(num_f_blocks, num_freq_masks * blocks_per_band))

    # ---- T blocking fallback (keeps v7x within its VMEM budget) --------------
    t_blk = T
    if f_blk * T * itemsize > target_tile_bytes and T % 128 == 0:
        best = 128
        t = 128
        while t <= T:
            if T % t == 0 and f_blk * t * itemsize <= target_tile_bytes:
                best = t
            t += 128
        t_blk = best
    # TODO(synk): if F % 8 != 0, T % 128 != 0 and a single (F, T) slice exceeds
    # the VMEM budget, this degenerates to unblocked (oversized) tiles.
    # TODO(synk): when T % 128 != 0 the stores are lane-padded (vst.msk); a
    # pad-to-128 / flatten-to-(BC, F*T) variant would make them lane-dense.
    num_t_blocks = T // t_blk

    # ---- fuse G (batch*channel) slices per grid step --------------------------
    block_slice_bytes = f_blk * t_blk * itemsize
    g_cap = max(1, target_tile_bytes // block_slice_bytes)
    g_cap = min(g_cap, max(1, BC // 8))   # keep >=8 bc steps when BC allows (v7x)
    G = _largest_divisor_at_most(BC, g_cap)
    num_bc_steps = BC // G

    # ---- resident keep mask (lane-dense when cheap) ---------------------------
    lane = t_blk if F * t_blk * itemsize <= (2 << 20) else 1
    keep_m = jnp.broadcast_to(
        keep_bool.astype(spec.dtype).reshape(1, F, 1), (1, F, lane))

    blk_ids = _hit_block_ids(keep_bool, f_blk, maxb)

    tile_bytes = G * block_slice_bytes
    mask_tile_bytes = f_blk * lane * itemsize
    vmem_limit = int(min(vmem_ceiling,
                         max(32 << 20,
                             4 * tile_bytes + 4 * mask_tile_bytes + (4 << 20))))

    out = pl.pallas_call(
        _freq_mask_kernel,
        out_shape=jax.ShapeDtypeStruct((BC, F, T), spec.dtype),
        grid_spec=pltpu.PrefetchScalarGridSpec(
            num_scalar_prefetch=1,
            grid=(num_bc_steps, num_t_blocks, maxb),
            in_specs=[
                # resident keep mask: F-block follows the prefetched block id
                pl.BlockSpec((1, f_blk, lane),
                             lambda i, t, j, blk: (0, blk[j], 0)),
                # spectrogram tile: only band-intersecting F-blocks are visited
                pl.BlockSpec((G, f_blk, t_blk),
                             lambda i, t, j, blk: (i, blk[j], t)),
            ],
            out_specs=pl.BlockSpec((G, f_blk, t_blk),
                                   lambda i, t, j, blk: (i, blk[j], t)),
        ),
        # operand order is (blk_ids, keep_m, x): alias x (flat index 2) -> out 0
        input_output_aliases={2: 0},
        compiler_params=pltpu.CompilerParams(
            dimension_semantics=("parallel", "parallel", "arbitrary"),
            vmem_limit_bytes=vmem_limit),
    )(blk_ids, keep_m, x)

    return out.reshape(B, C, F, T)


if __name__ == "__main__":
    # Donation is a perf-only concern; silence the (harmless) fallback warning.
    warnings.filterwarnings("ignore", message="Some donated buffers were not usable")

    # Small, module-consistent shapes: batch=2, channels=4, freq=64, time=128
    # (F a multiple of 8 so the band-only path engages; T=128 keeps stores
    # lane-dense).
    B, C, F, T = 2, 4, 64, 128
    FREQ_MASK_PARAM, NUM_FREQ_MASKS = 8, 2

    key = jax.random.PRNGKey(0)
    k_data, k_mask = jax.random.split(key)

    spectrogram = jax.random.normal(k_data, (B, C, F, T), dtype=jnp.float32)

    # Pure-JAX reference with the identical mask draw, computed BEFORE the
    # kernel call (the spectrogram buffer is donated to the kernel).
    keep_ref = _row_keep_bool(k_mask, F, FREQ_MASK_PARAM, NUM_FREQ_MASKS)
    expected = jnp.where(keep_ref.reshape(1, 1, F, 1), spectrogram,
                         jnp.zeros((), spectrogram.dtype))
    expected = jax.block_until_ready(expected)
    keep_ref = jax.block_until_ready(keep_ref)

    out = custom_frequency_masking(
        spectrogram, k_mask,
        freq_mask_param=FREQ_MASK_PARAM, num_freq_masks=NUM_FREQ_MASKS)
    out = jax.block_until_ready(out)
    # NOTE: `spectrogram` was donated (masked in place) - not referenced below.

    assert out.shape == (B, C, F, T) and out.dtype == expected.dtype
    assert bool(jnp.array_equal(out, expected))
    # every masked frequency row must be fully zeroed
    row_zero = jnp.all(out == 0.0, axis=(0, 1, 3))            # (F,)
    assert bool(jnp.all(jnp.where(keep_ref, True, row_zero)))

    print("KERNEL_OK")
</pallas_src>

<mosaic_0001>
module attributes {stable_mosaic.version = 11 : i64} {
  func.func @_freq_mask_kernel(%arg0: i32, %arg1: i32, %arg2: i32, %arg3: memref<4xi32, #tpu.memory_space<smem>>, %arg4: memref<1x8x128xf32, #tpu.memory_space<vmem>>, %arg5: memref<1x8x128xf32, #tpu.memory_space<vmem>>, %arg6: memref<1x8x128xf32, #tpu.memory_space<vmem>>) attributes {dimension_semantics = [#tpu.dimension_semantics<parallel>, #tpu.dimension_semantics<parallel>, #tpu.dimension_semantics<arbitrary>], iteration_bounds = array<i64: 8, 1, 4>, scalar_prefetch = 1 : i64, scratch_operands = 0 : i64, tpu.core_type = #tpu.core_type<tc>, window_params = [{transform_indices = @transform_0, window_bounds = array<i64: 1, 8, 128>}, {transform_indices = @transform_1, window_bounds = array<i64: 1, 8, 128>}, {transform_indices = @transform_2, window_bounds = array<i64: 1, 8, 128>}]} {
    %c0 = arith.constant 0 : index
    %c0_0 = arith.constant 0 : index
    %c0_1 = arith.constant 0 : index
    %0 = vector.load %arg5[%c0, %c0_0, %c0_1] : memref<1x8x128xf32, #tpu.memory_space<vmem>>, vector<1x8x128xf32>
    %c0_2 = arith.constant 0 : index
    %c0_3 = arith.constant 0 : index
    %c0_4 = arith.constant 0 : index
    %1 = vector.load %arg4[%c0_2, %c0_3, %c0_4] : memref<1x8x128xf32, #tpu.memory_space<vmem>>, vector<1x8x128xf32>
    %cst = arith.constant 0.000000e+00 : f32
    %2 = vector.broadcast %cst : f32 to vector<1x8x128xf32>
    %3 = arith.cmpf one, %1, %2 : vector<1x8x128xf32>
    %cst_5 = arith.constant 0.000000e+00 : f32
    %4 = vector.broadcast %cst_5 : f32 to vector<1x8x128xf32>
    %5 = arith.select %3, %0, %4 : vector<1x8x128xi1>, vector<1x8x128xf32>
    %c0_6 = arith.constant 0 : index
    %c0_7 = arith.constant 0 : index
    %c0_8 = arith.constant 0 : index
    %6 = vector.load %arg6[%c0_6, %c0_7, %c0_8] : memref<1x8x128xf32, #tpu.memory_space<vmem>>, vector<1x8x128xf32>
    tpu.vector_store %arg6[%c0_6, %c0_7, %c0_8], %5 {strides = array<i32>} : memref<1x8x128xf32, #tpu.memory_space<vmem>>, vector<1x8x128xf32>,
    return
  }
  func.func @transform_0(%arg0: i32, %arg1: i32, %arg2: i32, %arg3: memref<4xi32, #tpu.memory_space<smem>>) -> (i32, i32, i32) {
    %0 = arith.index_cast %arg2 : i32 to index
    %1 = memref.load %arg3[%0] : memref<4xi32, #tpu.memory_space<smem>>
    %c0_i32 = arith.constant 0 : i32
    %c0_i32_0 = arith.constant 0 : i32
    %c0_i32_1 = arith.constant 0 : i32
    return %c0_i32, %1, %c0_i32_0 : i32, i32, i32
  }
  func.func @transform_1(%arg0: i32, %arg1: i32, %arg2: i32, %arg3: memref<4xi32, #tpu.memory_space<smem>>) -> (i32, i32, i32) {
    %0 = arith.index_cast %arg2 : i32 to index
    %1 = memref.load %arg3[%0] : memref<4xi32, #tpu.memory_space<smem>>
    %c0_i32 = arith.constant 0 : i32
    return %arg0, %1, %arg1 : i32, i32, i32
  }
  func.func @transform_2(%arg0: i32, %arg1: i32, %arg2: i32, %arg3: memref<4xi32, #tpu.memory_space<smem>>) -> (i32, i32, i32) {
    %0 = arith.index_cast %arg2 : i32 to index
    %1 = memref.load %arg3[%0] : memref<4xi32, #tpu.memory_space<smem>>
    %c0_i32 = arith.constant 0 : i32
    return %arg0, %1, %arg1 : i32, i32, i32
  }
}

</mosaic_0001>

<bundles_post_ra>
// kernel: custom_frequency_masking.1
= control target key start
LH: loop header
LB: loop body
LE: loop exit
PB: predicated region body
PF: predicated region fallthrough
CT: control target
= control target key end

     0   :  { %s476_s15 = smov [#allocation3]   ;;  %s554_s0 = inlined_call_operand.vmem [shape: s32[4], index: 0, kind: input, shape index: {}]   ;;  %s555_s1 = inlined_call_operand.vmem [shape: f32[1,64,128], index: 1, kind: input, shape index: {}]   ;;  %s556_s2 = inlined_call_operand.vmem [shape: f32[8,64,128], index: 2, kind: input, shape index: {}, may-alias: {2,3}]   ;;  %s557_s3 = inlined_call_operand.vmem [shape: f32[8,64,128], index: 3, kind: output, shape index: {}, may-alias: {2,3}]  }
   0x1   :  { %s9_s14 = sshll.u32 %s554_s0, 4  ;;  %s10_s14 = int_to_ptr.vmem [resolvable:$true] %s9_s14 }
   0x2   :  { %12 = dma.vmem_to_smem %s10_s14, 16, %s476_s15, [#allocation2] }
   0x3   :  { %454 = dma.done.wait [#allocation2], 16 }
   0x4   :  { %455 = vsyncadd [#allocation2], 4294967280 }
   0x5   :  { %15 = sfence }
   0x6   :  { %s500_s16 = smov 0   ;;  %s502_s17 = smov 0  }
   0x7   :  { %s504_s18 = smov 0   ;;  %s506_s19 = smov 0  }
   0x8   :  { %s508_s20 = smov 0  }
   0x9 LB: > { %s33_s0 = sadd.s32 1, %s466_s18  ;;  %s40_s21 = sadd.s32 1, %s470_s19  ;;  %s474_s20 = sphi %s508_s20, %s21_s20   ;;  %s470_s19 = sphi %s506_s19, %s561_s19   ;;  %s466_s18 = sphi %s504_s18, %s560_s18   ;;  %s462_s17 = sphi %s502_s17, %s559_s17   ;;  %s458_s16 = sphi %s500_s16, %s558_s16  }
   0xa   : > { %p34_p0 = scmp.ge.s32.totalorder %s33_s0, 4  ;;  %p373_p1 = scmp.ge.s32.totalorder %s474_s20, 1 }
   0xb   : > { %p173_p2 = scmp.lt.s32.totalorder %s474_s20, 33 }
   0xc   : > { %s563_s0 = smov (%p34_p0, %s33_s0), 0  ;;  %s565_s21 = smov (!%p34_p0, %s40_s21), %s470_s19 }
   0xd   : > { %p174_p3 = pnand %p373_p1, %p173_p2  ;;  %p42_p4 = scmp.ge.s32.totalorder %s565_s21, 8 }
   0xe   : > { %s214_s22 = sld [smem:[#allocation3 + %s458_s16]] (!%p174_p3)  ;;  %p221_p5 = scmp.lt.s32.totalorder (!%p174_p3), %s462_s17, 7 }
   0xf   : > { %s567_s21 = smov (%p42_p4, %s565_s21), 0  ;;  %177 = sbr.rel (%p174_p3) target bundleno = 31 (0x1f), region = 28 }
  0x10   : > { %s220_s23 = sld [smem:[#allocation3 + %s458_s16]] (!%p174_p3) }
  0x11   : > { %s233_s24 = sld [smem:[#allocation3 + %s458_s16]] (!%p174_p3) }
  0x14   : > { %s569_s17 = smov (!%p221_p5, %s462_s17), 7  ;;  %p215_p6 = scmp.lt.s32.totalorder %s214_s22, 7 }
  0x15   : > { %s375_s25 = sshll.u32 %s569_s17, 3 }
  0x16   : > { %p223_p7 = scmp.lt.s32.totalorder %s220_s23, 7  ;;  %s571_s22 = smov (!%p215_p6, %s214_s22), 7 }
  0x17   : > { %s374_s26 = sshll.u32 %s571_s22, 3  ;;  %p236_p8 = scmp.lt.s32.totalorder %s233_s24, 7 }
  0x18   : > { %s573_s23 = smov (!%p223_p7, %s220_s23), 7  ;;  %s218_s29 = scalar_lea.vmem %s555_s1, %s374_s26 }
  0x19   : > { %s229_s30 = sadd.s32 %s375_s25, %s573_s23  ;;  %v247_v0 = vld [vmem:[%s218_s29] sm:$0xff]  ;;  %s575_s24 = smov (!%p236_p8, %s233_s24), 7 }
  0x1a   : > { %s376_s4 = sshll.u32 %s229_s30, 3  ;;  %vm248_vm0 = vcmp.ne.f32.partialorder %v247_v0, 0.0  ;;  %s242_s8 = sadd.s32 %s375_s25, %s575_s24 }
  0x1b   : > { %s231_s7 = scalar_lea.vmem %s556_s2, %s376_s4  ;;  %s378_s9 = sshll.u32 %s242_s8, 3 }
  0x1c   : > { %v246_v1 = vld [vmem:[%s231_s7] sm:$0xff]  ;;  %s244_s12 = scalar_lea.vmem %s557_s3, %s378_s9 }
  0x1d   : > { %v249_v2 = vsel %vm248_vm0, %v246_v1, 0.0 }
  0x1e   : > { %250 = vst [vmem:[%s244_s12] sm:$0xff] %v249_v2 }
  0x1f PF: > { %s21_s20 = sadd.s32 1, %s474_s20   ;;  %s558_s16 = smov %s466_s18 }
  0x20   : > { %p18_p9 = scmp.ge.s32.totalorder %s21_s20, 34   ;;  %s559_s17 = smov %s470_s19 }
  0x21   : > { %s560_s18 = smov %s563_s0  ;;  %s561_s19 = smov %s567_s21 }
  0x22   :  { %20 = sbr.rel (!%p18_p9) target bundleno = 9 (0x9), region = 61 }

</bundles_post_ra>
